<compile_context>
chip_gen: v5e
topology: v5e:2x2
jax: 0.10.0
libtpu: 0.0.40
codegen_flags: <defaults>
</compile_context>

<pallas_src>
import functools
import math

import jax
import jax.numpy as jnp
from jax.experimental import pallas as pl
from jax.experimental.pallas import tpu as pltpu

EPS = 1e-5
VMEM_LIMIT_BYTES = 32 * 1024 * 1024  # explicit scoped-VMEM budget (safe on v5e/v6e/v7x)


def _round_up(n, m):
    return pl.cdiv(n, m) * m


def _pick_tn(dout, tn_target=1024):
    """Tile Dout only when it is large and cleanly divisible (keeps blocks lane-dense)."""
    if dout > tn_target and dout % tn_target == 0:
        return tn_target
    return dout


# ----------------------------------------------------------------------------
# Kernels
# ----------------------------------------------------------------------------
def _linear_kernel(*refs, activation, has_residual):
    """out = [gelu](x @ w + b) [+ residual], f32 accumulation, native-dtype MXU operands."""
    if has_residual:
        x_ref, w_ref, b_ref, r_ref, o_ref = refs
    else:
        x_ref, w_ref, b_ref, o_ref = refs
        r_ref = None
    acc = jnp.dot(x_ref[...], w_ref[...], preferred_element_type=jnp.float32)
    acc = acc + b_ref[...].astype(jnp.float32)
    if activation == "gelu":
        # TODO(synk): torch nn.GELU default is exact erf; tanh approximation used for Mosaic-safe lowering.
        acc = jax.nn.gelu(acc, approximate=True)
    if r_ref is not None:
        acc = acc + r_ref[...].astype(jnp.float32)
    o_ref[...] = acc.astype(o_ref.dtype)


def _prenorm_linear_kernel(x_ref, g_ref, bln_ref, w_ref, b_ref, o_ref, *, activation):
    """Fused PreNorm: out = [gelu](LayerNorm(x) @ w + b). LN math in f32, one-pass variance."""
    x = x_ref[...].astype(jnp.float32)
    mean = jnp.mean(x, axis=-1, keepdims=True)
    ex2 = jnp.mean(x * x, axis=-1, keepdims=True)
    var = jnp.maximum(ex2 - mean * mean, 0.0)           # biased variance, like torch
    y = (x - mean) * jax.lax.rsqrt(var + EPS)
    y = y * g_ref[...].astype(jnp.float32) + bln_ref[...].astype(jnp.float32)
    acc = jnp.dot(y.astype(w_ref.dtype), w_ref[...], preferred_element_type=jnp.float32)
    acc = acc + b_ref[...].astype(jnp.float32)
    if activation == "gelu":
        acc = jax.nn.gelu(acc, approximate=True)
    o_ref[...] = acc.astype(o_ref.dtype)


def _attention_kernel(q_ref, k_ref, v_ref, o_ref, *, scale):
    """One (batch*head) slice: softmax(q k^T * scale) v, f32 softmax/accumulation."""
    q = q_ref[...]                                       # (1, N, Dh)
    k = k_ref[...]
    v = v_ref[...]
    s = jnp.einsum("bqd,bkd->bqk", q, k, preferred_element_type=jnp.float32) * scale
    s = s - jnp.max(s, axis=-1, keepdims=True)
    p = jnp.exp(s)
    p = p / jnp.sum(p, axis=-1, keepdims=True)
    o = jnp.einsum("bqk,bkd->bqd", p.astype(v.dtype), v, preferred_element_type=jnp.float32)
    o_ref[...] = o.astype(o_ref.dtype)


# ----------------------------------------------------------------------------
# Wrappers
# ----------------------------------------------------------------------------
def linear_pallas(x, w, b=None, *, residual=None, activation=None, tm=256, tn_target=1024):
    """x: [..., Din]; w: [Din, Dout]; b: [Dout]|None; residual: [..., Dout]|None."""
    orig_shape = x.shape
    din, dout = w.shape
    rows = math.prod(orig_shape[:-1]) if len(orig_shape) > 1 else 1
    x2 = x.reshape(rows, din)
    if b is None:
        b = jnp.zeros((dout,), w.dtype)
    b2 = b.reshape(1, dout)
    res2 = residual.reshape(rows, dout) if residual is not None else None

    tm = min(tm, _round_up(rows, 8))
    rows_p = _round_up(rows, tm)
    if rows_p != rows:
        x2 = jnp.pad(x2, ((0, rows_p - rows), (0, 0)))
        if res2 is not None:
            res2 = jnp.pad(res2, ((0, rows_p - rows), (0, 0)))
    tn = _pick_tn(dout, tn_target)
    grid = (rows_p // tm, dout // tn)

    in_specs = [
        pl.BlockSpec((tm, din), lambda i, j: (i, 0)),
        pl.BlockSpec((din, tn), lambda i, j: (0, j)),
        pl.BlockSpec((1, tn), lambda i, j: (0, j)),
    ]
    args = [x2, w, b2]
    if res2 is not None:
        in_specs.append(pl.BlockSpec((tm, tn), lambda i, j: (i, j)))
        args.append(res2)

    kernel = functools.partial(_linear_kernel, activation=activation,
                               has_residual=res2 is not None)
    out = pl.pallas_call(
        kernel,
        out_shape=jax.ShapeDtypeStruct((rows_p, dout), x.dtype),
        grid_spec=pltpu.PrefetchScalarGridSpec(
            num_scalar_prefetch=0,
            grid=grid,
            in_specs=in_specs,
            out_specs=pl.BlockSpec((tm, tn), lambda i, j: (i, j)),
        ),
        compiler_params=pltpu.CompilerParams(
            dimension_semantics=("parallel", "parallel"),
            vmem_limit_bytes=VMEM_LIMIT_BYTES),
    )(*args)
    if rows_p != rows:
        out = out[:rows]
    return out.reshape(orig_shape[:-1] + (dout,))


def prenorm_linear_pallas(x, gamma, beta, w, b=None, *, activation=None, tm=256, tn_target=1024):
    """Fused LayerNorm(dim) -> Linear(Din, Dout) [-> GELU]."""
    orig_shape = x.shape
    din, dout = w.shape
    rows = math.prod(orig_shape[:-1]) if len(orig_shape) > 1 else 1
    x2 = x.reshape(rows, din)
    g2 = gamma.reshape(1, din)
    bln2 = beta.reshape(1, din)
    if b is None:
        b = jnp.zeros((dout,), w.dtype)
    b2 = b.reshape(1, dout)

    tm = min(tm, _round_up(rows, 8))
    rows_p = _round_up(rows, tm)
    if rows_p != rows:
        x2 = jnp.pad(x2, ((0, rows_p - rows), (0, 0)))
    tn = _pick_tn(dout, tn_target)
    grid = (rows_p // tm, dout // tn)

    kernel = functools.partial(_prenorm_linear_kernel, activation=activation)
    out = pl.pallas_call(
        kernel,
        out_shape=jax.ShapeDtypeStruct((rows_p, dout), x.dtype),
        grid_spec=pltpu.PrefetchScalarGridSpec(
            num_scalar_prefetch=0,
            grid=grid,
            in_specs=[
                pl.BlockSpec((tm, din), lambda i, j: (i, 0)),
                pl.BlockSpec((1, din), lambda i, j: (0, 0)),
                pl.BlockSpec((1, din), lambda i, j: (0, 0)),
                pl.BlockSpec((din, tn), lambda i, j: (0, j)),
                pl.BlockSpec((1, tn), lambda i, j: (0, j)),
            ],
            out_specs=pl.BlockSpec((tm, tn), lambda i, j: (i, j)),
        ),
        compiler_params=pltpu.CompilerParams(
            dimension_semantics=("parallel", "parallel"),
            vmem_limit_bytes=VMEM_LIMIT_BYTES),
    )(x2, g2, bln2, w, b2)
    if rows_p != rows:
        out = out[:rows]
    return out.reshape(orig_shape[:-1] + (dout,))


def attention_pallas(q, k, v, scale):
    """q,k,v: [B*H, N, Dh] -> [B*H, N, Dh]. One head per grid step (N is small in ViT)."""
    bh, n, dh = q.shape
    kernel = functools.partial(_attention_kernel, scale=scale)
    spec = pl.BlockSpec((1, n, dh), lambda i: (i, 0, 0))
    return pl.pallas_call(
        kernel,
        out_shape=jax.ShapeDtypeStruct((bh, n, dh), q.dtype),
        grid_spec=pltpu.PrefetchScalarGridSpec(
            num_scalar_prefetch=0,
            grid=(bh,),
            in_specs=[spec, spec, spec],
            out_specs=spec,
        ),
        compiler_params=pltpu.CompilerParams(
            dimension_semantics=("parallel",),
            vmem_limit_bytes=VMEM_LIMIT_BYTES),
    )(q, k, v)


# ----------------------------------------------------------------------------
# Model
# ----------------------------------------------------------------------------
def sinusoidal_pe(max_len, d_model):
    position = jnp.arange(max_len, dtype=jnp.float32)[:, None]
    div_term = jnp.exp(jnp.arange(0, d_model, 2, dtype=jnp.float32)
                       * (-math.log(10000.0) / d_model))
    pe = jnp.zeros((max_len, d_model), jnp.float32)
    pe = pe.at[:, 0::2].set(jnp.sin(position * div_term))
    pe = pe.at[:, 1::2].set(jnp.cos(position * div_term))
    return pe[None]                                      # [1, max_len, d_model]


class PallasViT:
    def __init__(self, key, *, input_dim, output_dim, dim, depth, heads, dim_head,
                 mlp_dim, pool="cls", max_len=500, dtype=jnp.float32):
        assert pool in ("cls", "mean")
        self.heads, self.dim_head = heads, dim_head
        self.scale = dim_head ** -0.5
        self.pool = pool
        self.project_out = not (heads == 1 and dim_head == dim)
        inner = heads * dim_head

        keys = iter(jax.random.split(key, 8 + 8 * depth))

        def w_init(shape, s=0.02):
            return (jax.random.normal(next(keys), shape, jnp.float32) * s).astype(dtype)

        self.w_proj = w_init((input_dim, dim))
        self.b_proj = w_init((dim,), 0.01)
        self.pe = sinusoidal_pe(max_len, dim).astype(dtype)
        self.cls_token = w_init((1, 1, dim))             # defined by the torch module, unused in forward
        self.layers = []
        for _ in range(depth):
            self.layers.append(dict(
                ln1_g=jnp.ones((dim,), dtype), ln1_b=jnp.zeros((dim,), dtype),
                w_qkv=w_init((dim, inner * 3)),          # to_qkv has no bias
                w_out=w_init((inner, dim)), b_out=w_init((dim,), 0.01),
                ln2_g=jnp.ones((dim,), dtype), ln2_b=jnp.zeros((dim,), dtype),
                w_ff1=w_init((dim, mlp_dim)), b_ff1=w_init((mlp_dim,), 0.01),
                w_ff2=w_init((mlp_dim, dim)), b_ff2=w_init((dim,), 0.01),
            ))
        self.head_ln_g = jnp.ones((dim,), dtype)
        self.head_ln_b = jnp.zeros((dim,), dtype)
        self.w_head = w_init((dim, output_dim))
        self.b_head = w_init((output_dim,), 0.01)

    def _attention_block(self, x, p):
        b, n, _ = x.shape
        h, dh = self.heads, self.dim_head
        # fused PreNorm + to_qkv (no bias)
        qkv = prenorm_linear_pallas(x, p["ln1_g"], p["ln1_b"], p["w_qkv"])
        qkv = qkv.reshape(b, n, 3, h, dh)
        q = jnp.transpose(qkv[:, :, 0], (0, 2, 1, 3)).reshape(b * h, n, dh)
        k = jnp.transpose(qkv[:, :, 1], (0, 2, 1, 3)).reshape(b * h, n, dh)
        v = jnp.transpose(qkv[:, :, 2], (0, 2, 1, 3)).reshape(b * h, n, dh)
        o = attention_pallas(q, k, v, self.scale)
        o = jnp.transpose(o.reshape(b, h, n, dh), (0, 2, 1, 3)).reshape(b, n, h * dh)
        if self.project_out:
            return linear_pallas(o, p["w_out"], p["b_out"], residual=x)  # to_out + residual fused
        return o + x

    def _ff_block(self, x, p):
        h = prenorm_linear_pallas(x, p["ln2_g"], p["ln2_b"], p["w_ff1"], p["b_ff1"],
                                  activation="gelu")                     # LN + Linear + GELU fused
        return linear_pallas(h, p["w_ff2"], p["b_ff2"], residual=x)      # Linear + residual fused

    def __call__(self, x):
        x = linear_pallas(x, self.w_proj, self.b_proj)                   # project
        n = x.shape[1]
        x = x + self.pe[:, :n, :].astype(x.dtype)                        # positional encoding
        # emb_dropout / dropouts: identity at inference
        for p in self.layers:
            x = self._attention_block(x, p)
            x = self._ff_block(x, p)
        pooled = jnp.mean(x, axis=1) if self.pool == "mean" else x[:, 0]
        h = prenorm_linear_pallas(pooled, self.head_ln_g, self.head_ln_b,
                                  self.w_head, self.b_head)              # mlp_head (LN + Linear fused)
        return jnp.tanh(h)


# ----------------------------------------------------------------------------
# Pure-JAX reference (same math / dtypes) for correctness checking
# ----------------------------------------------------------------------------
def vit_reference(m, x):
    f32 = jnp.float32
    hi = jax.lax.Precision.HIGHEST

    def ln(t, g, b):
        tf = t.astype(f32)
        mu = tf.mean(-1, keepdims=True)
        var = ((tf - mu) ** 2).mean(-1, keepdims=True)
        y = (tf - mu) * jax.lax.rsqrt(var + EPS) * g.astype(f32) + b.astype(f32)
        return y.astype(t.dtype)

    def lin(t, w, b=None):
        y = jnp.dot(t, w, preferred_element_type=f32, precision=hi)
        if b is not None:
            y = y + b.astype(f32)
        return y.astype(t.dtype)

    x = lin(x, m.w_proj, m.b_proj)
    n = x.shape[1]
    x = x + m.pe[:, :n, :].astype(x.dtype)
    h_, dh = m.heads, m.dim_head
    for p in m.layers:
        b, nn_, _ = x.shape
        qkv = lin(ln(x, p["ln1_g"], p["ln1_b"]), p["w_qkv"]).reshape(b, nn_, 3, h_, dh)
        q, k, v = (jnp.transpose(qkv[:, :, t], (0, 2, 1, 3)) for t in range(3))
        dots = jnp.einsum("bhid,bhjd->bhij", q, k, preferred_element_type=f32) * m.scale
        attn = jax.nn.softmax(dots, axis=-1)
        o = jnp.einsum("bhij,bhjd->bhid", attn.astype(v.dtype), v,
                       preferred_element_type=f32).astype(x.dtype)
        o = jnp.transpose(o, (0, 2, 1, 3)).reshape(b, nn_, h_ * dh)
        if m.project_out:
            o = lin(o, p["w_out"], p["b_out"])
        x = o + x
        hmid = jax.nn.gelu(lin(ln(x, p["ln2_g"], p["ln2_b"]), p["w_ff1"], p["b_ff1"]).astype(f32),
                           approximate=True).astype(x.dtype)
        x = lin(hmid, p["w_ff2"], p["b_ff2"]) + x
    pooled = jnp.mean(x, axis=1) if m.pool == "mean" else x[:, 0]
    return jnp.tanh(lin(ln(pooled, m.head_ln_g, m.head_ln_b), m.w_head, m.b_head))


# ----------------------------------------------------------------------------
if __name__ == "__main__":
    key = jax.random.PRNGKey(0)
    kparam, kx = jax.random.split(key)

    # Small shapes consistent with the module (scaled-down ViT)
    B, S = 2, 8
    cfg = dict(input_dim=64, output_dim=128, dim=128, depth=2,
               heads=4, dim_head=32, mlp_dim=256, pool="cls")

    x_f32 = jax.random.normal(kx, (B, S, cfg["input_dim"]), jnp.float32)

    # 1) float32 run + correctness check vs pure-JAX reference
    model_f32 = PallasViT(kparam, dtype=jnp.float32, **cfg)
    out = jax.block_until_ready(model_f32(x_f32))
    ref = jax.block_until_ready(vit_reference(model_f32, x_f32))
    assert out.shape == (B, cfg["output_dim"])
    assert bool(jnp.all(jnp.isfinite(out)))
    assert jnp.allclose(out, ref, atol=2e-2, rtol=2e-2), "mismatch vs reference"

    # 2) bfloat16 run: exercises the native bf16 MXU path (operands stay bf16, f32 accumulation)
    model_bf16 = PallasViT(kparam, dtype=jnp.bfloat16, **cfg)
    out_bf16 = jax.block_until_ready(model_bf16(x_f32.astype(jnp.bfloat16)))
    assert out_bf16.shape == (B, cfg["output_dim"])
    assert bool(jnp.all(jnp.isfinite(out_bf16.astype(jnp.float32))))

    print("KERNEL_OK")
</pallas_src>

<mosaic_0001>
module attributes {stable_mosaic.version = 11 : i64} {
  func.func @_linear_kernel(%arg0: i32, %arg1: i32, %arg2: memref<16x64xf32, #tpu.memory_space<vmem>>, %arg3: memref<64x128xf32, #tpu.memory_space<vmem>>, %arg4: memref<1x128xf32, #tpu.memory_space<vmem>>, %arg5: memref<16x128xf32, #tpu.memory_space<vmem>>) attributes {dimension_semantics = [#tpu.dimension_semantics<parallel>, #tpu.dimension_semantics<parallel>], iteration_bounds = array<i64: 1, 1>, scalar_prefetch = 0 : i64, scratch_operands = 0 : i64, tpu.core_type = #tpu.core_type<tc>, window_params = [{transform_indices = @transform_0, window_bounds = array<i64: 16, 64>}, {transform_indices = @transform_1, window_bounds = array<i64: 64, 128>}, {transform_indices = @transform_2, window_bounds = array<i64: 1, 128>}, {transform_indices = @transform_3, window_bounds = array<i64: 16, 128>}]} {
    %c0 = arith.constant 0 : index
    %c0_0 = arith.constant 0 : index
    %0 = vector.load %arg2[%c0, %c0_0] : memref<16x64xf32, #tpu.memory_space<vmem>>, vector<16x64xf32>
    %c0_1 = arith.constant 0 : index
    %c0_2 = arith.constant 0 : index
    %1 = vector.load %arg3[%c0_1, %c0_2] : memref<64x128xf32, #tpu.memory_space<vmem>>, vector<64x128xf32>
    %cst = arith.constant dense<0.000000e+00> : vector<16x128xf32>
    %2 = tpu.matmul %0, %1, %cst {dimension_numbers = #tpu.dot_dimension_numbers<[1], [0], [0], [1], [0, 0, 1, 1], [], []>} : vector<16x64xf32>, vector<64x128xf32>, vector<16x128xf32> -> vector<16x128xf32>
    %c0_3 = arith.constant 0 : index
    %c0_4 = arith.constant 0 : index
    %3 = vector.load %arg4[%c0_3, %c0_4] : memref<1x128xf32, #tpu.memory_space<vmem>>, vector<1x128xf32>
    %4 = vector.broadcast %3 : vector<1x128xf32> to vector<16x128xf32>
    %5 = arith.addf %2, %4 : vector<16x128xf32>
    %c0_5 = arith.constant 0 : index
    %c0_6 = arith.constant 0 : index
    %6 = vector.load %arg5[%c0_5, %c0_6] : memref<16x128xf32, #tpu.memory_space<vmem>>, vector<16x128xf32>
    tpu.vector_store %arg5[%c0_5, %c0_6], %5 {strides = array<i32>} : memref<16x128xf32, #tpu.memory_space<vmem>>, vector<16x128xf32>,
    return
  }
  func.func @transform_0(%arg0: i32, %arg1: i32) -> (i32, i32) {
    %c0_i32 = arith.constant 0 : i32
    %c0_i32_0 = arith.constant 0 : i32
    return %arg0, %c0_i32 : i32, i32
  }
  func.func @transform_1(%arg0: i32, %arg1: i32) -> (i32, i32) {
    %c0_i32 = arith.constant 0 : i32
    %c0_i32_0 = arith.constant 0 : i32
    return %c0_i32, %arg1 : i32, i32
  }
  func.func @transform_2(%arg0: i32, %arg1: i32) -> (i32, i32) {
    %c0_i32 = arith.constant 0 : i32
    %c0_i32_0 = arith.constant 0 : i32
    return %c0_i32, %arg1 : i32, i32
  }
  func.func @transform_3(%arg0: i32, %arg1: i32) -> (i32, i32) {
    %c0_i32 = arith.constant 0 : i32
    return %arg0, %arg1 : i32, i32
  }
}

</mosaic_0001>

<bundles_post_ra>
// kernel: tpu_custom_call.1
= control target key start
LH: loop header
LB: loop body
LE: loop exit
PB: predicated region body
PF: predicated region fallthrough
CT: control target
= control target key end

     0   :  { %8 = vsyncpa [#allocation3], 0  ;;  %s253_s0 = inlined_call_operand.hbm [shape: f32[16,64], index: 0, kind: input, shape index: {}]   ;;  %s254_s1 = inlined_call_operand.hbm [shape: f32[64,128], index: 1, kind: input, shape index: {}]   ;;  %s255_s2 = inlined_call_operand.vmem [shape: f32[1,128], index: 2, kind: input, shape index: {}]   ;;  %s256_s3 = inlined_call_operand.hbm [shape: f32[16,128], index: 3, kind: output, shape index: {}]  }
   0x1   :  { %9 = vsyncpa [#allocation6], 0 }
   0x2   :  { %10 = vsyncpa [#allocation4], 0  ;;  %s15_s14 = sshll.u32 %s253_s0, 4  ;;  %s207_s15 = smov [#allocation2]   ;;  %s16_s14 = int_to_ptr.hbm [resolvable:$true] %s15_s14 }
   0x3   :  { %s17_s16 = sshll.u32 %s207_s15, 4  ;;  %s28_s19 = sshll.u32 %s254_s1, 4  ;;  %s18_s16 = int_to_ptr.vmem [resolvable:$true] %s17_s16  ;;  %s29_s19 = int_to_ptr.hbm [resolvable:$true] %s28_s19 }
   0x4   :  { %s208_s20 = smov 128   ;;  %s209_s21 = smov 8  }
   0x5   :  { %23 = dma.hbm_to_vmem [thread:$0]  %s16_s14, 256, %s18_s16, [#allocation3], %s208_s20, %s208_s20, %s209_s21  }
   0x6   :  { %s210_s22 = smov [#allocation5]  }
   0x7   :  { %s30_s23 = sshll.u32 %s210_s22, 4  ;;  %s31_s23 = int_to_ptr.vmem [resolvable:$true] %s30_s23 }
   0x8   :  { %36 = dma.hbm_to_vmem [thread:$0]  %s29_s19, 1024, %s31_s23, [#allocation6], %s208_s20, %s208_s20, %s209_s21  }
   0x9   :  { %201 = dma.done.wait [#allocation3], 256  }
   0xa   :  { %202 = vsyncadd [#allocation3], 4294967040 }
   0xb   :  { %203 = dma.done.wait [#allocation6], 1024  }
   0xc   :  { %204 = vsyncadd [#allocation6], 4294966272  ;;  %v56_v0 = vld [vmem:[#allocation5 + $0x38] sm:$0xff]  ;;  %v55_v1 = vld [vmem:[#allocation5 + $0x30] sm:$0xff]  ;;  %vm61_vm0 = vcmask 523264   ;;  %s211_s24 = smov [#allocation7]  }
   0xd   :  { %76 = vmatpush.msra.mxu0 %v56_v0  ;;  %115 = vmatpush.msra.mxu1 %v56_v0  ;;  %v54_v2 = vld [vmem:[#allocation5 + $0x28] sm:$0xff]  ;;  %v53_v3 = vld [vmem:[#allocation5 + $0x20] sm:$0xff]  ;;  %v52_v4 = vld [vmem:[#allocation5 + $0x18] sm:$0xff]  ;;  %s97_s25 = sshll.u32 %s211_s24, 4  ;;  %s99_s28 = sshll.u32 %s256_s3, 4  ;;  %s98_s25 = int_to_ptr.vmem [resolvable:$true] %s97_s25  ;;  %s100_s28 = int_to_ptr.hbm [resolvable:$true] %s99_s28 }
   0xe   :  { %v51_v5 = vld [vmem:[#allocation5 + $0x10] sm:$0xff]  ;;  %v50_v6 = vld [vmem:[#allocation5 + $0x8] sm:$0xff]  ;;  %v49_v7 = vld [vmem:[#allocation5] sm:$0xff] }
   0xf   :  { %77 = vmatpush.msra.mxu0 %v55_v1  ;;  %116 = vmatpush.msra.mxu1 %v55_v1  ;;  %v47_v8 = vld [vmem:[#allocation2] sm:$0xff]  ;;  %v48_v9 = vld [vmem:[#allocation2 + $0x8] sm:$0xff] }
  0x10   :  { %v128_v10 = vld [vmem:[%s255_s2] ss:$0 sm:$0xff] }
  0x11   :  { %78 = vmatpush.msra.mxu0 %v54_v2  ;;  %117 = vmatpush.msra.mxu1 %v54_v2 }
  0x13   :  { %79 = vmatpush.msra.mxu0 %v53_v3  ;;  %118 = vmatpush.msra.mxu1 %v53_v3 }
  0x15   :  { %80 = vmatpush.msra.mxu0 %v52_v4  ;;  %119 = vmatpush.msra.mxu1 %v52_v4 }
  0x17   :  { %81 = vmatpush.msra.mxu0 %v51_v5  ;;  %120 = vmatpush.msra.mxu1 %v51_v5 }
  0x19   :  { %82 = vmatpush.msra.mxu0 %v50_v6  ;;  %121 = vmatpush.msra.mxu1 %v50_v6 }
  0x1b   :  { %83 = vmatpush.msra.mxu0 %v49_v7  ;;  %122 = vmatpush.msra.mxu1 %v49_v7 }
  0x1c   :  { %113 = vmatmul.msk.f32.vlgmr.msra.gmra.mxu0 %vm61_vm0, %v47_v8  ;;  %114 = vmatmul.msk.f32.vlgmr.msra.gmra.mxu1 %vm61_vm0, %v48_v9 }
  0x99   :  { %v85_v11 = vpop.f32.mrf.mxu0  ;;  %v88_v12 = vpop.f32.mrf.mxu1 }
  0x9a   :  { %v86_v13 = vadd.f32 %v128_v10, %v85_v11  ;;  %v89_v14 = vadd.f32 %v128_v10, %v88_v12 }
  0x9c   :  { %91 = vst [vmem:[#allocation7] sm:$0xff] %v86_v13 }
  0x9d   :  { %92 = vst [vmem:[#allocation7 + $0x8] sm:$0xff] %v89_v14 }
  0x9e   :  { %105 = dma.vmem_to_hbm [thread:$0]  %s98_s25, 256, %s100_s28, [#allocation4], %s208_s20, %s208_s20, %s209_s21  }
  0x9f   :  { %205 = dma.done.wait [#allocation4], 256  }
  0xa0   :  { %206 = vsyncadd [#allocation4], 4294967040 }
  0xa1   :  { %110 = vsyncpa [#allocation3], 1 }
  0xa2   :  { %111 = vsyncpa [#allocation6], 1 }
  0xa3   :  { %112 = vsyncpa [#allocation4], 1 }

</bundles_post_ra>
